<compile_context>
chip_gen: v7x
topology: tpu7x:2x2x1
jax: 0.10.0
libtpu: 0.0.40
codegen_flags: <defaults>
</compile_context>

<pallas_src>
import jax
import jax.numpy as jnp
from jax.experimental import pallas as pl
from jax.experimental.pallas import tpu as pltpu

SELU_ALPHA = 1.6732632423543772
SELU_SCALE = 1.0507009873554804

HIDDEN = 200        # logical hidden width of the torch module
LANES = 128         # TPU lane width


def _round_up(v, m):
    return ((v + m - 1) // m) * m


def _cdiv(a, b):
    return -(-a // b)


def _relu(v):
    return jnp.maximum(v, 0.0)


def _selu(v):
    return SELU_SCALE * jnp.where(v > 0.0, v, SELU_ALPHA * (jnp.exp(v) - 1.0))


# ----------------------------------------------------------------------------- kernel


def res2_kernel(x_ref,
                w1_ref, b1_ref, w2_ref, b2_ref, w3_ref, b3_ref,
                w4_ref, b4_ref, w5_ref, b5_ref, w6_ref, b6_ref,
                w7_ref, b7_ref,
                o_ref):
    x = x_ref[...]                                   # (TILE_B, n_particles) f32
    compute_dtype = w1_ref.dtype                     # bf16 (MXU operands)
    ew_dtype = b1_ref.dtype                          # bf16 (v6e/v7x) or f32 (v5e)

    def lin_relu(v, w_ref, b_ref):
        # bf16 operands, f32 accumulation on the MXU; bias-add + ReLU on the
        # VPU in ew_dtype (bf16 halves VALU work on v6e/v7x).
        h = jnp.dot(v, w_ref[...], preferred_element_type=jnp.float32)
        h = h.astype(ew_dtype) + b_ref[...]
        return _relu(h).astype(compute_dtype)

    y = lin_relu(x.astype(compute_dtype), w1_ref, b1_ref)
    y = lin_relu(y, w2_ref, b2_ref)
    y = lin_relu(y, w3_ref, b3_ref)
    y = lin_relu(y, w4_ref, b4_ref)
    y = lin_relu(y, w5_ref, b5_ref)

    # Layer 6 + residual in f32 (tiny: (TILE_B, n_particles)).
    h6 = jnp.dot(y, w6_ref[...], preferred_element_type=jnp.float32)
    y = _relu(x + h6 + b6_ref[...])

    # Layer 7 (n_particles -> 1): VPU multiply + XLU lane reduction + EUP SELU;
    # an N=1 MXU matmul would waste a whole MXU pass.
    z = jnp.sum(y * w7_ref[...], axis=-1, keepdims=True) + b7_ref[0, 0]
    o_ref[...] = _selu(z).astype(o_ref.dtype)        # (TILE_B, 1)


# ----------------------------------------------------------------------------- wrapper


def init_params(key, n_particles):
    """PyTorch nn.Linear default init: U(-1/sqrt(fan_in), +1/sqrt(fan_in))."""
    dims = [(n_particles, 200), (200, 200), (200, 200), (200, 200),
            (200, 200), (200, n_particles), (n_particles, 1)]
    params = []
    for fan_in, fan_out in dims:
        key, kw, kb = jax.random.split(key, 3)
        bound = 1.0 / jnp.sqrt(float(fan_in))
        w = jax.random.uniform(kw, (fan_in, fan_out), jnp.float32, -bound, bound)
        b = jax.random.uniform(kb, (fan_out,), jnp.float32, -bound, bound)
        params += [w, b]
    return tuple(params)


def pack_params(params, n_particles,
                compute_dtype=jnp.bfloat16,
                elementwise_dtype=jnp.bfloat16):
    """Pad only the hidden dim (200 -> 256) to a lane multiple; the
    n_particles feature dim stays unpadded (MXU handles K/N < 128).
    Matmul weights are cast to compute_dtype; hidden-layer biases to
    elementwise_dtype (use jnp.float32 on v5e: no bf16 VPU there)."""
    (w1, b1, w2, b2, w3, b3, w4, b4, w5, b5, w6, b6, w7, b7) = params
    h_pad = _round_up(HIDDEN, LANES)

    def pad_w(w, rows, cols, dtype):
        out = jnp.zeros((rows, cols), jnp.float32)
        out = out.at[:w.shape[0], :w.shape[1]].set(w)
        return out.astype(dtype)

    def pad_b(b, cols, dtype):
        out = jnp.zeros((1, cols), jnp.float32)
        return out.at[0, :b.shape[-1]].set(jnp.ravel(b)).astype(dtype)

    return (
        pad_w(w1, n_particles, h_pad, compute_dtype), pad_b(b1, h_pad, elementwise_dtype),
        pad_w(w2, h_pad, h_pad, compute_dtype),       pad_b(b2, h_pad, elementwise_dtype),
        pad_w(w3, h_pad, h_pad, compute_dtype),       pad_b(b3, h_pad, elementwise_dtype),
        pad_w(w4, h_pad, h_pad, compute_dtype),       pad_b(b4, h_pad, elementwise_dtype),
        pad_w(w5, h_pad, h_pad, compute_dtype),       pad_b(b5, h_pad, elementwise_dtype),
        pad_w(w6, h_pad, n_particles, compute_dtype), pad_b(b6, n_particles, jnp.float32),
        # final layer runs on the VPU/XLU -> keep it f32
        pad_w(jnp.transpose(w7), 1, n_particles, jnp.float32),
        jnp.reshape(b7.astype(jnp.float32), (1, 1)),
    )


def _choose_tile_b(B):
    """Tail-aware batch tiling: ~512-row tiles, but >= 4 grid steps once the
    batch is big enough (>= 2 steps per v7x TensorCore for pipelining and
    megacore sharding)."""
    if B <= 128:
        return _round_up(max(B, 8), 8)          # single tile
    n_tiles = max(4, _cdiv(B, 512))
    return _round_up(_cdiv(B, n_tiles), 8)


def res2_forward(x, packed, tile_b=None):
    """x: (B, n_particles) f32.  packed: output of pack_params."""
    B, n_p = x.shape
    h_pad = packed[0].shape[1]

    if tile_b is None:
        tile_b = _choose_tile_b(B)
    tile_b = min(tile_b, _round_up(max(B, 8), 8))
    b_pad = _round_up(B, tile_b)
    grid = (b_pad // tile_b,)

    x_pad = x if b_pad == B else jnp.zeros((b_pad, n_p), x.dtype).at[:B].set(x)

    def resident(shape):
        nd = len(shape)
        return pl.BlockSpec(shape, lambda i, _nd=nd: (0,) * _nd)  # stays in VMEM

    weight_specs = [resident(p.shape) for p in packed[:-1]]
    b7_spec = pl.BlockSpec((1, 1), lambda i: (0, 0),
                           memory_space=pltpu.MemorySpace.SMEM)

    in_specs = ([pl.BlockSpec((tile_b, n_p), lambda i: (i, 0))]
                + weight_specs + [b7_spec])
    out_specs = pl.BlockSpec((tile_b, 1), lambda i: (i, 0))

    flops = 2 * b_pad * (n_p * h_pad + 4 * h_pad * h_pad + h_pad * n_p + n_p)
    bytes_accessed = int(b_pad * n_p * 4 + b_pad * 4
                         + sum(int(p.size) * p.dtype.itemsize for p in packed))
    cost = pl.CostEstimate(flops=flops, transcendentals=b_pad,
                           bytes_accessed=bytes_accessed)

    out = pl.pallas_call(
        res2_kernel,
        grid=grid,
        out_shape=jax.ShapeDtypeStruct((b_pad, 1), jnp.float32),
        in_specs=in_specs,
        out_specs=out_specs,
        compiler_params=pltpu.CompilerParams(
            dimension_semantics=("parallel",)),
        cost_estimate=cost,
    )(x_pad, *packed)

    return out if b_pad == B else out[:B]


# ----------------------------------------------------------------------------- references


def res2_reference_f32(x, params):
    """Exact f32 math semantics of the torch module."""
    (w1, b1, w2, b2, w3, b3, w4, b4, w5, b5, w6, b6, w7, b7) = params
    y = _relu(x @ w1 + b1)
    y = _relu(y @ w2 + b2)
    y = _relu(y @ w3 + b3)
    y = _relu(y @ w4 + b4)
    y = _relu(y @ w5 + b5)
    y = _relu(x + y @ w6 + b6)
    y = _selu(y @ w7 + b7)
    return y


def res2_reference_packed(x, packed):
    """Same padded / mixed-precision path as the kernel, in plain jnp."""
    (w1, b1, w2, b2, w3, b3, w4, b4, w5, b5, w6, b6, w7, b7) = packed
    cd = w1.dtype
    ew = b1.dtype

    def lin_relu(v, w, b):
        h = jnp.dot(v, w, preferred_element_type=jnp.float32)
        return _relu(h.astype(ew) + b).astype(cd)

    y = lin_relu(x.astype(cd), w1, b1)
    y = lin_relu(y, w2, b2)
    y = lin_relu(y, w3, b3)
    y = lin_relu(y, w4, b4)
    y = lin_relu(y, w5, b5)
    h6 = jnp.dot(y, w6, preferred_element_type=jnp.float32)
    y = _relu(x + h6 + b6)
    z = jnp.sum(y * w7, axis=-1, keepdims=True) + b7[0, 0]
    return _selu(z)


# ----------------------------------------------------------------------------- main


if __name__ == "__main__":
    n_particles = 16
    key = jax.random.PRNGKey(0)
    key, kx, kx2 = jax.random.split(key, 3)
    params = init_params(key, n_particles)
    # For v5e, prefer elementwise_dtype=jnp.float32 (no bf16 VPU there).
    packed = pack_params(params, n_particles,
                         compute_dtype=jnp.bfloat16,
                         elementwise_dtype=jnp.bfloat16)

    # Small-shape check (single grid step).
    x_small = jax.random.normal(kx, (8, n_particles), jnp.float32)
    out_small = jax.block_until_ready(res2_forward(x_small, packed))
    ref_small = res2_reference_packed(x_small, packed)
    assert out_small.shape == (8, 1)
    assert jnp.allclose(out_small, ref_small, atol=1e-3, rtol=1e-3), \
        float(jnp.max(jnp.abs(out_small - ref_small)))

    # Loose semantic sanity check vs. exact f32 math (bf16 rounding only).
    ref_f32 = res2_reference_f32(x_small, params)
    assert float(jnp.max(jnp.abs(out_small - ref_f32))) < 0.3

    # Larger batch exercises the batch grid (4 "parallel" tiles of 128).
    x_big = jax.random.normal(kx2, (512, n_particles), jnp.float32)
    out_big = jax.block_until_ready(res2_forward(x_big, packed))
    ref_big = res2_reference_packed(x_big, packed)
    assert out_big.shape == (512, 1)
    assert jnp.allclose(out_big, ref_big, atol=1e-3, rtol=1e-3)

    print("KERNEL_OK")
</pallas_src>

<mosaic_0001>
module attributes {stable_mosaic.version = 11 : i64} {
  func.func @res2_kernel(%arg0: i32, %arg1: memref<8x16xf32, #tpu.memory_space<vmem>>, %arg2: memref<16x256xbf16, #tpu.memory_space<vmem>>, %arg3: memref<1x256xbf16, #tpu.memory_space<vmem>>, %arg4: memref<256x256xbf16, #tpu.memory_space<vmem>>, %arg5: memref<1x256xbf16, #tpu.memory_space<vmem>>, %arg6: memref<256x256xbf16, #tpu.memory_space<vmem>>, %arg7: memref<1x256xbf16, #tpu.memory_space<vmem>>, %arg8: memref<256x256xbf16, #tpu.memory_space<vmem>>, %arg9: memref<1x256xbf16, #tpu.memory_space<vmem>>, %arg10: memref<256x256xbf16, #tpu.memory_space<vmem>>, %arg11: memref<1x256xbf16, #tpu.memory_space<vmem>>, %arg12: memref<256x16xbf16, #tpu.memory_space<vmem>>, %arg13: memref<1x16xf32, #tpu.memory_space<vmem>>, %arg14: memref<1x16xf32, #tpu.memory_space<vmem>>, %arg15: memref<1x1xf32, #tpu.memory_space<smem>>, %arg16: memref<8x1xf32, #tpu.memory_space<vmem>>) attributes {dimension_semantics = [#tpu.dimension_semantics<parallel>], iteration_bounds = array<i64: 1>, scalar_prefetch = 0 : i64, scratch_operands = 0 : i64, tpu.core_type = #tpu.core_type<tc>, window_params = [{transform_indices = @transform_0, window_bounds = array<i64: 8, 16>}, {pipeline_mode = #tpu.pipeline_mode<synchronous>, transform_indices = @transform_1, window_bounds = array<i64: 16, 256>}, {pipeline_mode = #tpu.pipeline_mode<synchronous>, transform_indices = @transform_2, window_bounds = array<i64: 1, 256>}, {pipeline_mode = #tpu.pipeline_mode<synchronous>, transform_indices = @transform_3, window_bounds = array<i64: 256, 256>}, {pipeline_mode = #tpu.pipeline_mode<synchronous>, transform_indices = @transform_4, window_bounds = array<i64: 1, 256>}, {pipeline_mode = #tpu.pipeline_mode<synchronous>, transform_indices = @transform_5, window_bounds = array<i64: 256, 256>}, {pipeline_mode = #tpu.pipeline_mode<synchronous>, transform_indices = @transform_6, window_bounds = array<i64: 1, 256>}, {pipeline_mode = #tpu.pipeline_mode<synchronous>, transform_indices = @transform_7, window_bounds = array<i64: 256, 256>}, {pipeline_mode = #tpu.pipeline_mode<synchronous>, transform_indices = @transform_8, window_bounds = array<i64: 1, 256>}, {pipeline_mode = #tpu.pipeline_mode<synchronous>, transform_indices = @transform_9, window_bounds = array<i64: 256, 256>}, {pipeline_mode = #tpu.pipeline_mode<synchronous>, transform_indices = @transform_10, window_bounds = array<i64: 1, 256>}, {pipeline_mode = #tpu.pipeline_mode<synchronous>, transform_indices = @transform_11, window_bounds = array<i64: 256, 16>}, {pipeline_mode = #tpu.pipeline_mode<synchronous>, transform_indices = @transform_12, window_bounds = array<i64: 1, 16>}, {pipeline_mode = #tpu.pipeline_mode<synchronous>, transform_indices = @transform_13, window_bounds = array<i64: 1, 16>}, {transform_indices = @transform_14, window_bounds = array<i64: 1, 1>}, {transform_indices = @transform_15, window_bounds = array<i64: 8, 1>}]} {
    %c0 = arith.constant 0 : index
    %c0_0 = arith.constant 0 : index
    %0 = vector.load %arg1[%c0, %c0_0] : memref<8x16xf32, #tpu.memory_space<vmem>>, vector<8x16xf32>
    %1 = arith.truncf %0 : vector<8x16xf32> to vector<8x16xbf16>
    %c0_1 = arith.constant 0 : index
    %c0_2 = arith.constant 0 : index
    %2 = vector.load %arg2[%c0_1, %c0_2] : memref<16x256xbf16, #tpu.memory_space<vmem>>, vector<16x256xbf16>
    %cst = arith.constant dense<0.000000e+00> : vector<8x256xf32>
    %3 = tpu.matmul %1, %2, %cst {dimension_numbers = #tpu.dot_dimension_numbers<[1], [0], [0], [1], [0, 0, 1, 1], [], []>} : vector<8x16xbf16>, vector<16x256xbf16>, vector<8x256xf32> -> vector<8x256xf32>
    %4 = arith.truncf %3 : vector<8x256xf32> to vector<8x256xbf16>
    %c0_3 = arith.constant 0 : index
    %c0_4 = arith.constant 0 : index
    %5 = vector.load %arg3[%c0_3, %c0_4] : memref<1x256xbf16, #tpu.memory_space<vmem>>, vector<1x256xbf16>
    %6 = vector.broadcast %5 : vector<1x256xbf16> to vector<8x256xbf16>
    %7 = arith.addf %4, %6 : vector<8x256xbf16>
    %cst_5 = arith.constant 0.000000e+00 : bf16
    %8 = vector.broadcast %cst_5 : bf16 to vector<8x256xbf16>
    %9 = arith.maximumf %7, %8 : vector<8x256xbf16>
    %c0_6 = arith.constant 0 : index
    %c0_7 = arith.constant 0 : index
    %10 = vector.load %arg4[%c0_6, %c0_7] : memref<256x256xbf16, #tpu.memory_space<vmem>>, vector<256x256xbf16>
    %cst_8 = arith.constant dense<0.000000e+00> : vector<8x256xf32>
    %11 = tpu.matmul %9, %10, %cst_8 {dimension_numbers = #tpu.dot_dimension_numbers<[1], [0], [0], [1], [0, 0, 1, 1], [], []>} : vector<8x256xbf16>, vector<256x256xbf16>, vector<8x256xf32> -> vector<8x256xf32>
    %12 = arith.truncf %11 : vector<8x256xf32> to vector<8x256xbf16>
    %c0_9 = arith.constant 0 : index
    %c0_10 = arith.constant 0 : index
    %13 = vector.load %arg5[%c0_9, %c0_10] : memref<1x256xbf16, #tpu.memory_space<vmem>>, vector<1x256xbf16>
    %14 = vector.broadcast %13 : vector<1x256xbf16> to vector<8x256xbf16>
    %15 = arith.addf %12, %14 : vector<8x256xbf16>
    %cst_11 = arith.constant 0.000000e+00 : bf16
    %16 = vector.broadcast %cst_11 : bf16 to vector<8x256xbf16>
    %17 = arith.maximumf %15, %16 : vector<8x256xbf16>
    %c0_12 = arith.constant 0 : index
    %c0_13 = arith.constant 0 : index
    %18 = vector.load %arg6[%c0_12, %c0_13] : memref<256x256xbf16, #tpu.memory_space<vmem>>, vector<256x256xbf16>
    %cst_14 = arith.constant dense<0.000000e+00> : vector<8x256xf32>
    %19 = tpu.matmul %17, %18, %cst_14 {dimension_numbers = #tpu.dot_dimension_numbers<[1], [0], [0], [1], [0, 0, 1, 1], [], []>} : vector<8x256xbf16>, vector<256x256xbf16>, vector<8x256xf32> -> vector<8x256xf32>
    %20 = arith.truncf %19 : vector<8x256xf32> to vector<8x256xbf16>
    %c0_15 = arith.constant 0 : index
    %c0_16 = arith.constant 0 : index
    %21 = vector.load %arg7[%c0_15, %c0_16] : memref<1x256xbf16, #tpu.memory_space<vmem>>, vector<1x256xbf16>
    %22 = vector.broadcast %21 : vector<1x256xbf16> to vector<8x256xbf16>
    %23 = arith.addf %20, %22 : vector<8x256xbf16>
    %cst_17 = arith.constant 0.000000e+00 : bf16
    %24 = vector.broadcast %cst_17 : bf16 to vector<8x256xbf16>
    %25 = arith.maximumf %23, %24 : vector<8x256xbf16>
    %c0_18 = arith.constant 0 : index
    %c0_19 = arith.constant 0 : index
    %26 = vector.load %arg8[%c0_18, %c0_19] : memref<256x256xbf16, #tpu.memory_space<vmem>>, vector<256x256xbf16>
    %cst_20 = arith.constant dense<0.000000e+00> : vector<8x256xf32>
    %27 = tpu.matmul %25, %26, %cst_20 {dimension_numbers = #tpu.dot_dimension_numbers<[1], [0], [0], [1], [0, 0, 1, 1], [], []>} : vector<8x256xbf16>, vector<256x256xbf16>, vector<8x256xf32> -> vector<8x256xf32>
    %28 = arith.truncf %27 : vector<8x256xf32> to vector<8x256xbf16>
    %c0_21 = arith.constant 0 : index
    %c0_22 = arith.constant 0 : index
    %29 = vector.load %arg9[%c0_21, %c0_22] : memref<1x256xbf16, #tpu.memory_space<vmem>>, vector<1x256xbf16>
    %30 = vector.broadcast %29 : vector<1x256xbf16> to vector<8x256xbf16>
    %31 = arith.addf %28, %30 : vector<8x256xbf16>
    %cst_23 = arith.constant 0.000000e+00 : bf16
    %32 = vector.broadcast %cst_23 : bf16 to vector<8x256xbf16>
    %33 = arith.maximumf %31, %32 : vector<8x256xbf16>
    %c0_24 = arith.constant 0 : index
    %c0_25 = arith.constant 0 : index
    %34 = vector.load %arg10[%c0_24, %c0_25] : memref<256x256xbf16, #tpu.memory_space<vmem>>, vector<256x256xbf16>
    %cst_26 = arith.constant dense<0.000000e+00> : vector<8x256xf32>
    %35 = tpu.matmul %33, %34, %cst_26 {dimension_numbers = #tpu.dot_dimension_numbers<[1], [0], [0], [1], [0, 0, 1, 1], [], []>} : vector<8x256xbf16>, vector<256x256xbf16>, vector<8x256xf32> -> vector<8x256xf32>
    %36 = arith.truncf %35 : vector<8x256xf32> to vector<8x256xbf16>
    %c0_27 = arith.constant 0 : index
    %c0_28 = arith.constant 0 : index
    %37 = vector.load %arg11[%c0_27, %c0_28] : memref<1x256xbf16, #tpu.memory_space<vmem>>, vector<1x256xbf16>
    %38 = vector.broadcast %37 : vector<1x256xbf16> to vector<8x256xbf16>
    %39 = arith.addf %36, %38 : vector<8x256xbf16>
    %cst_29 = arith.constant 0.000000e+00 : bf16
    %40 = vector.broadcast %cst_29 : bf16 to vector<8x256xbf16>
    %41 = arith.maximumf %39, %40 : vector<8x256xbf16>
    %c0_30 = arith.constant 0 : index
    %c0_31 = arith.constant 0 : index
    %42 = vector.load %arg12[%c0_30, %c0_31] : memref<256x16xbf16, #tpu.memory_space<vmem>>, vector<256x16xbf16>
    %cst_32 = arith.constant dense<0.000000e+00> : vector<8x16xf32>
    %43 = tpu.matmul %41, %42, %cst_32 {dimension_numbers = #tpu.dot_dimension_numbers<[1], [0], [0], [1], [0, 0, 1, 1], [], []>} : vector<8x256xbf16>, vector<256x16xbf16>, vector<8x16xf32> -> vector<8x16xf32>
    %44 = arith.addf %0, %43 : vector<8x16xf32>
    %c0_33 = arith.constant 0 : index
    %c0_34 = arith.constant 0 : index
    %45 = vector.load %arg13[%c0_33, %c0_34] : memref<1x16xf32, #tpu.memory_space<vmem>>, vector<1x16xf32>
    %46 = vector.broadcast %45 : vector<1x16xf32> to vector<8x16xf32>
    %47 = arith.addf %44, %46 : vector<8x16xf32>
    %cst_35 = arith.constant 0.000000e+00 : f32
    %48 = vector.broadcast %cst_35 : f32 to vector<8x16xf32>
    %49 = arith.maximumf %47, %48 : vector<8x16xf32>
    %c0_36 = arith.constant 0 : index
    %c0_37 = arith.constant 0 : index
    %50 = vector.load %arg14[%c0_36, %c0_37] : memref<1x16xf32, #tpu.memory_space<vmem>>, vector<1x16xf32>
    %51 = vector.broadcast %50 : vector<1x16xf32> to vector<8x16xf32>
    %52 = arith.mulf %49, %51 : vector<8x16xf32>
    %cst_38 = arith.constant dense<0.000000e+00> : vector<8xf32>
    %53 = vector.multi_reduction <add>, %52, %cst_38 [1] : vector<8x16xf32> to vector<8xf32>
    %54 = vector.shape_cast %53 : vector<8xf32> to vector<8x1xf32>
    %c0_39 = arith.constant 0 : index
    %c0_40 = arith.constant 0 : index
    %55 = memref.load %arg15[%c0_39, %c0_40] : memref<1x1xf32, #tpu.memory_space<smem>>
    %56 = vector.broadcast %55 : f32 to vector<8x1xf32>
    %57 = arith.addf %54, %56 : vector<8x1xf32>
    %cst_41 = arith.constant 0.000000e+00 : f32
    %58 = vector.broadcast %cst_41 : f32 to vector<8x1xf32>
    %59 = arith.cmpf ogt, %57, %58 : vector<8x1xf32>
    %60 = math.exp %57 : vector<8x1xf32>
    %cst_42 = arith.constant 1.000000e+00 : f32
    %61 = vector.broadcast %cst_42 : f32 to vector<8x1xf32>
    %62 = arith.subf %60, %61 : vector<8x1xf32>
    %cst_43 = arith.constant 1.67326319 : f32
    %63 = vector.broadcast %cst_43 : f32 to vector<8x1xf32>
    %64 = arith.mulf %63, %62 : vector<8x1xf32>
    %65 = arith.select %59, %57, %64 : vector<8x1xi1>, vector<8x1xf32>
    %cst_44 = arith.constant 1.05070102 : f32
    %66 = vector.broadcast %cst_44 : f32 to vector<8x1xf32>
    %67 = arith.mulf %66, %65 : vector<8x1xf32>
    %c0_45 = arith.constant 0 : index
    %c0_46 = arith.constant 0 : index
    %68 = vector.load %arg16[%c0_45, %c0_46] : memref<8x1xf32, #tpu.memory_space<vmem>>, vector<8x1xf32>
    tpu.vector_store %arg16[%c0_45, %c0_46], %67 {strides = array<i32>} : memref<8x1xf32, #tpu.memory_space<vmem>>, vector<8x1xf32>,
    return
  }
  func.func @transform_0(%arg0: i32) -> (i32, i32) {
    %c0_i32 = arith.constant 0 : i32
    %c0_i32_0 = arith.constant 0 : i32
    return %arg0, %c0_i32 : i32, i32
  }
  func.func @transform_1(%arg0: i32) -> (i32, i32) {
    %c0_i32 = arith.constant 0 : i32
    %c0_i32_0 = arith.constant 0 : i32
    %c0_i32_1 = arith.constant 0 : i32
    return %c0_i32, %c0_i32_0 : i32, i32
  }
  func.func @transform_2(%arg0: i32) -> (i32, i32) {
    %c0_i32 = arith.constant 0 : i32
    %c0_i32_0 = arith.constant 0 : i32
    %c0_i32_1 = arith.constant 0 : i32
    return %c0_i32, %c0_i32_0 : i32, i32
  }
  func.func @transform_3(%arg0: i32) -> (i32, i32) {
    %c0_i32 = arith.constant 0 : i32
    %c0_i32_0 = arith.constant 0 : i32
    %c0_i32_1 = arith.constant 0 : i32
    return %c0_i32, %c0_i32_0 : i32, i32
  }
  func.func @transform_4(%arg0: i32) -> (i32, i32) {
    %c0_i32 = arith.constant 0 : i32
    %c0_i32_0 = arith.constant 0 : i32
    %c0_i32_1 = arith.constant 0 : i32
    return %c0_i32, %c0_i32_0 : i32, i32
  }
  func.func @transform_5(%arg0: i32) -> (i32, i32) {
    %c0_i32 = arith.constant 0 : i32
    %c0_i32_0 = arith.constant 0 : i32
    %c0_i32_1 = arith.constant 0 : i32
    return %c0_i32, %c0_i32_0 : i32, i32
  }
  func.func @transform_6(%arg0: i32) -> (i32, i32) {
    %c0_i32 = arith.constant 0 : i32
    %c0_i32_0 = arith.constant 0 : i32
    %c0_i32_1 = arith.constant 0 : i32
    return %c0_i32, %c0_i32_0 : i32, i32
  }
  func.func @transform_7(%arg0: i32) -> (i32, i32) {
    %c0_i32 = arith.constant 0 : i32
    %c0_i32_0 = arith.constant 0 : i32
    %c0_i32_1 = arith.constant 0 : i32
    return %c0_i32, %c0_i32_0 : i32, i32
  }
  func.func @transform_8(%arg0: i32) -> (i32, i32) {
    %c0_i32 = arith.constant 0 : i32
    %c0_i32_0 = arith.constant 0 : i32
    %c0_i32_1 = arith.constant 0 : i32
    return %c0_i32, %c0_i32_0 : i32, i32
  }
  func.func @transform_9(%arg0: i32) -> (i32, i32) {
    %c0_i32 = arith.constant 0 : i32
    %c0_i32_0 = arith.constant 0 : i32
    %c0_i32_1 = arith.constant 0 : i32
    return %c0_i32, %c0_i32_0 : i32, i32
  }
  func.func @transform_10(%arg0: i32) -> (i32, i32) {
    %c0_i32 = arith.constant 0 : i32
    %c0_i32_0 = arith.constant 0 : i32
    %c0_i32_1 = arith.constant 0 : i32
    return %c0_i32, %c0_i32_0 : i32, i32
  }
  func.func @transform_11(%arg0: i32) -> (i32, i32) {
    %c0_i32 = arith.constant 0 : i32
    %c0_i32_0 = arith.constant 0 : i32
    %c0_i32_1 = arith.constant 0 : i32
    return %c0_i32, %c0_i32_0 : i32, i32
  }
  func.func @transform_12(%arg0: i32) -> (i32, i32) {
    %c0_i32 = arith.constant 0 : i32
    %c0_i32_0 = arith.constant 0 : i32
    %c0_i32_1 = arith.constant 0 : i32
    return %c0_i32, %c0_i32_0 : i32, i32
  }
  func.func @transform_13(%arg0: i32) -> (i32, i32) {
    %c0_i32 = arith.constant 0 : i32
    %c0_i32_0 = arith.constant 0 : i32
    %c0_i32_1 = arith.constant 0 : i32
    return %c0_i32, %c0_i32_0 : i32, i32
  }
  func.func @transform_14(%arg0: i32) -> (i32, i32) {
    %c0_i32 = arith.constant 0 : i32
    %c0_i32_0 = arith.constant 0 : i32
    %c0_i32_1 = arith.constant 0 : i32
    return %c0_i32, %c0_i32_0 : i32, i32
  }
  func.func @transform_15(%arg0: i32) -> (i32, i32) {
    %c0_i32 = arith.constant 0 : i32
    %c0_i32_0 = arith.constant 0 : i32
    return %arg0, %c0_i32 : i32, i32
  }
}

</mosaic_0001>

<bundles_post_ra>
// kernel: tpu_custom_call.1
= control target key start
LH: loop header
LB: loop body
LE: loop exit
PB: predicated region body
PF: predicated region fallthrough
CT: control target
= control target key end

     0   :  { %21 = vsyncpa [#allocation4], 0  ;;  %s2305_s0 = inlined_call_operand.vmem [shape: f32[8,16], index: 0, kind: input, shape index: {}]   ;;  %s2306_s1 = inlined_call_operand.vmem [shape: bf16[16,256], index: 1, kind: input, shape index: {}]   ;;  %s2307_s2 = inlined_call_operand.vmem [shape: bf16[1,256], index: 2, kind: input, shape index: {}]   ;;  %s2308_s3 = inlined_call_operand.hbm [shape: bf16[256,256], index: 3, kind: input, shape index: {}]   ;;  %s2309_s4 = inlined_call_operand.vmem [shape: bf16[1,256], index: 4, kind: input, shape index: {}]   ;;  %s2310_s5 = inlined_call_operand.hbm [shape: bf16[256,256], index: 5, kind: input, shape index: {}]   ;;  %s2311_s6 = inlined_call_operand.vmem [shape: bf16[1,256], index: 6, kind: input, shape index: {}]   ;;  %s2312_s7 = inlined_call_operand.hbm [shape: bf16[256,256], index: 7, kind: input, shape index: {}]   ;;  %s2313_s8 = inlined_call_operand.vmem [shape: bf16[1,256], index: 8, kind: input, shape index: {}]   ;;  %s2314_s9 = inlined_call_operand.hbm [shape: bf16[256,256], index: 9, kind: input, shape index: {}]   ;;  %s2315_s10 = inlined_call_operand.vmem [shape: bf16[1,256], index: 10, kind: input, shape index: {}]   ;;  %s2316_s11 = inlined_call_operand.vmem [shape: bf16[256,16], index: 11, kind: input, shape index: {}]   ;;  %s2317_s12 = inlined_call_operand.vmem [shape: f32[1,16], index: 12, kind: input, shape index: {}]   ;;  %s2318_s13 = inlined_call_operand.vmem [shape: f32[1,16], index: 13, kind: input, shape index: {}]   ;;  %s2319_s14 = inlined_call_operand.<no memory space> [shape: f32[1,1], index: 14, kind: input, shape index: {}]   ;;  %s2320_s15 = inlined_call_operand.vmem [shape: f32[8,1], index: 15, kind: output, shape index: {}]  }
   0x1   :  { %22 = vsyncpa [#allocation6], 0 }
   0x2   :  { %23 = vsyncpa [#allocation9], 0  ;;  %s2019_s18 = smov [#allocation5]   ;;  %s2020_s20 = smov [#allocation3]  }
   0x3   :  { %s49_s19 = sshll.u32 %s2019_s18, 4  ;;  %s35_s21 = sshll.u32 %s2020_s20, 4  ;;  %s50_s19 = int_to_ptr.vmem [resolvable:$true] %s49_s19  ;;  %s2107_s21 = int_to_ptr.vmem [resolvable:$true] %s35_s21 }
   0x4   :  { %s1925_s24 = scalar_lea.hbm %s2310_s5, 4096 }
   0x5   :  { %p1926_p0 = scmp.ne.s32.totalorder %s2310_s5, %s1925_s24  ;;  %p1929_p1 = scmp.lt.u32.totalorder %s1925_s24, %s2310_s5 }
   0x7   :  { %p1931_p2 = pnand %p1929_p1, %p1926_p0 }
   0x9   :  { %1934 = shalt.err (!%p1931_p2)
}
   0xa   :  { %s1935_s29 = scalar_lea.vmem %s50_s19, 4096  ;;  %p1940_p4 = scmp.lt.s32.totalorder %s50_s19, %s50_s19 }
   0xb   :  { %p1936_p3 = scmp.ne.s32.totalorder %s50_s19, %s1935_s29  ;;  %p1941_p5 = scmp.lt.s32.totalorder %s1935_s29, %s1935_s29 }
   0xd   :  { %p1942_p6 = por %p1941_p5, %p1940_p4 }
   0xf   :  { %p1943_p7 = pnand %p1942_p6, %p1936_p3 }
  0x11   :  { %1946 = shalt.err (!%p1943_p7)
}
  0x12   :  { %s2021_s30 = smov 128   ;;  %s2022_s16 = smov 8  }
  0x13   :  { %55 = dma.hbm_to_vmem [thread:$0]  %s2310_s5, 4096, %s50_s19, [#allocation6], %s2021_s30, %s2021_s30, %s2022_s16  }
  0x14   :  { %s1947_s23 = scalar_lea.hbm %s2308_s3, 4096 }
  0x15   :  { %p1948_p8 = scmp.ne.s32.totalorder %s2308_s3, %s1947_s23  ;;  %p1951_p9 = scmp.lt.u32.totalorder %s1947_s23, %s2308_s3 }
  0x17   :  { %p1953_p10 = pnand %p1951_p9, %p1948_p8 }
  0x19   :  { %1956 = shalt.err (!%p1953_p10)
}
  0x1a   :  { %s1957_s28 = scalar_lea.vmem %s2107_s21, 4096  ;;  %p1962_p12 = scmp.lt.s32.totalorder %s2107_s21, %s2107_s21 }
  0x1b   :  { %p1958_p11 = scmp.ne.s32.totalorder %s2107_s21, %s1957_s28  ;;  %p1963_p13 = scmp.lt.s32.totalorder %s1957_s28, %s1957_s28 }
  0x1d   :  { %p1964_p0 = por %p1963_p13, %p1962_p12 }
  0x1f   :  { %p1965_p1 = pnand %p1964_p0, %p1958_p11 }
  0x21   :  { %1968 = shalt.err (!%p1965_p1)
}
  0x22   :  { %41 = dma.hbm_to_vmem [thread:$0]  %s2308_s3, 4096, %s2107_s21, [#allocation4], %s2021_s30, %s2021_s30, %s2022_s16  }
  0x23   :  { %s2023_s29 = smov [#allocation7]   ;;  %s2024_s18 = smov [#allocation8]  }
  0x24   :  { %s63_s17 = sshll.u32 %s2023_s29, 4  ;;  %s77_s20 = sshll.u32 %s2024_s18, 4  ;;  %s64_s17 = int_to_ptr.vmem [resolvable:$true] %s63_s17  ;;  %s2144_s20 = int_to_ptr.vmem [resolvable:$true] %s77_s20 }
  0x25   :  { %s1969_s24 = scalar_lea.hbm %s2312_s7, 4096 }
  0x26   :  { %p1970_p2 = scmp.ne.s32.totalorder %s2312_s7, %s1969_s24  ;;  %p1973_p3 = scmp.lt.u32.totalorder %s1969_s24, %s2312_s7 }
  0x28   :  { %p1975_p4 = pnand %p1973_p3, %p1970_p2 }
  0x2a   :  { %1978 = shalt.err (!%p1975_p4)
}
  0x2b   :  { %s1979_s3 = scalar_lea.vmem %s64_s17, 4096  ;;  %p1984_p6 = scmp.lt.s32.totalorder %s64_s17, %s64_s17 }
  0x2c   :  { %p1980_p5 = scmp.ne.s32.totalorder %s64_s17, %s1979_s3  ;;  %p1985_p7 = scmp.lt.s32.totalorder %s1979_s3, %s1979_s3 }
  0x2e   :  { %p1986_p8 = por %p1985_p7, %p1984_p6 }
  0x30   :  { %p1987_p9 = pnand %p1986_p8, %p1980_p5 }
  0x32   :  { %1990 = shalt.err (!%p1987_p9)
}
  0x33   :  { %69 = dma.hbm_to_vmem [thread:$0]  %s2312_s7, 4096, %s64_s17, [#allocation6], %s2021_s30, %s2021_s30, %s2022_s16  }
  0x34   :  { %s1991_s18 = scalar_lea.hbm %s2314_s9, 4096 }
  0x35   :  { %p1992_p10 = scmp.ne.s32.totalorder %s2314_s9, %s1991_s18  ;;  %p1995_p11 = scmp.lt.u32.totalorder %s1991_s18, %s2314_s9 }
  0x37   :  { %p1997_p12 = pnand %p1995_p11, %p1992_p10 }
  0x39   :  { %2000 = shalt.err (!%p1997_p12)
}
  0x3a   :  { %s2001_s26 = scalar_lea.vmem %s2144_s20, 4096  ;;  %p2006_p0 = scmp.lt.s32.totalorder %s2144_s20, %s2144_s20 }
  0x3b   :  { %p2002_p13 = scmp.ne.s32.totalorder %s2144_s20, %s2001_s26  ;;  %p2007_p1 = scmp.lt.s32.totalorder %s2001_s26, %s2001_s26 }
  0x3d   :  { %p2008_p2 = por %p2007_p1, %p2006_p0 }
  0x3f   :  { %p2009_p3 = pnand %p2008_p2, %p2002_p13 }
  0x41   :  { %2012 = shalt.err (!%p2009_p3)
}
  0x42   :  { %83 = dma.hbm_to_vmem [thread:$0]  %s2314_s9, 4096, %s2144_s20, [#allocation9], %s2021_s30, %s2021_s30, %s2022_s16  }
  0x43   :  { %2013 = dma.done.wait [#allocation4], 4096  }
  0x44   :  { %2014 = vsyncadd [#allocation4], 4294963200 }
  0x45   :  { %2015 = dma.done.wait [#allocation6], 8192  }
  0x46   :  { %2016 = vsyncadd [#allocation6], 4294959104 }
  0x47   :  { %2017 = dma.done.wait [#allocation9], 4096  }
  0x48   :  { %2018 = vsyncadd [#allocation9], 4294963200  ;;  %v2025_v0 = vmov 0   ;;  %v1711_v1 = vld [vmem:[%s2306_s1 + $0x4] ss:$8 sps:$4 sm:$0xff]   ;;  %vm121_vm0 = vcmask 130048  }
  0x49   :  { %157 = vmatprep.mubr.bf16.mxu0 %v2025_v0  ;;  %v1713_v2 = vld [vmem:[%s2306_s1] ss:$8 sps:$4 sm:$0xff]   ;;  %125 = vmatprep.subr.bf16.mxu0 %v1711_v1  ;;  %v1714_v5 = vld [vmem:[#allocation3 + $0x4] ss:$8 sps:$4 sm:$0xff]   ;;  %v1717_v7 = vld [vmem:[#allocation3 + $0x14] ss:$8 sps:$4 sm:$0xff]  }
  0x4a   :  { %v107_v3 = vld [vmem:[%s2305_s0] sm:$0xff]  ;;  %126 = vmatpush1.bf16.msra.mxu0 %v1713_v2  ;;  %402 = vmatprep.subr.bf16.mxu1 %v1714_v5  ;;  %v1719_v8 = vld [vmem:[#allocation3 + $0x10] ss:$8 sps:$4 sm:$0xff]   ;;  %v1723_v11 = vld [vmem:[#allocation3 + $0x34] ss:$8 sps:$4 sm:$0xff]   ;;  %vm1517_vm2 = vcmask 7168  }
  0x4b   :  { %v108_v4 = vpack.c.bf16 %v107_v3, %v107_v3  ;;  %v1716_v6 = vld [vmem:[#allocation3] ss:$8 sps:$4 sm:$0xff]   ;;  %v1720_v9 = vld [vmem:[#allocation3 + $0x24] ss:$8 sps:$4 sm:$0xff]   ;;  %v1725_v12 = vld [vmem:[#allocation3 + $0x30] ss:$8 sps:$4 sm:$0xff]  }
  0x4c   :  { %403 = vmatpush1.bf16.msra.mxu1 %v1716_v6  ;;  %v1722_v10 = vld [vmem:[#allocation3 + $0x20] ss:$8 sps:$4 sm:$0xff]   ;;  %v1726_v13 = vld [vmem:[#allocation3 + $0x44] ss:$8 sps:$4 sm:$0xff]   ;;  %v1729_v15 = vld [vmem:[#allocation3 + $0x54] ss:$8 sps:$4 sm:$0xff]  }
  0x4d   :  { %1528 = vmatmul.mubr.msk.bf16.vlgmr.msra.gmra.mrb[0].mxu0 %vm121_vm0, %v108_v4  ;;  %404 = vmatprep.subr.bf16.mxu1 %v1717_v7  ;;  %v1728_v14 = vld [vmem:[#allocation3 + $0x40] ss:$8 sps:$4 sm:$0xff]   ;;  %v1731_v16 = vld [vmem:[#allocation3 + $0x50] ss:$8 sps:$4 sm:$0xff]   ;;  %v1732_v17 = vld [vmem:[#allocation3 + $0x64] ss:$8 sps:$4 sm:$0xff]   ;;  %v181_v4 = vlaneseq }
  0x4e   :  { %v1734_v18 = vld [vmem:[#allocation3 + $0x60] ss:$8 sps:$4 sm:$0xff]   ;;  %v1735_v19 = vld [vmem:[#allocation3 + $0x74] ss:$8 sps:$4 sm:$0xff]   ;;  %v1737_v20 = vld [vmem:[#allocation3 + $0x70] ss:$8 sps:$4 sm:$0xff]  }
  0x4f   :  { %v1738_v21 = vld [vmem:[#allocation3 + $0x84] ss:$8 sps:$4 sm:$0xff]   ;;  %v1740_v22 = vld [vmem:[#allocation3 + $0x80] ss:$8 sps:$4 sm:$0xff]   ;;  %v1741_v23 = vld [vmem:[#allocation3 + $0x94] ss:$8 sps:$4 sm:$0xff]  }
  0x50   :  { %405 = vmatpush1.bf16.msra.mxu1 %v1719_v8  ;;  %v1743_v24 = vld [vmem:[#allocation3 + $0x90] ss:$8 sps:$4 sm:$0xff]   ;;  %v1744_v25 = vld [vmem:[#allocation3 + $0xa4] ss:$8 sps:$4 sm:$0xff]   ;;  %v1746_v26 = vld [vmem:[#allocation3 + $0xa0] ss:$8 sps:$4 sm:$0xff]  }
  0x51   :  { %406 = vmatprep.subr.bf16.mxu1 %v1720_v9  ;;  %v1747_v27 = vld [vmem:[#allocation3 + $0xb4] ss:$8 sps:$4 sm:$0xff]   ;;  %v1749_v28 = vld [vmem:[#allocation3 + $0xb0] ss:$8 sps:$4 sm:$0xff]   ;;  %v1750_v29 = vld [vmem:[#allocation3 + $0xc4] ss:$8 sps:$4 sm:$0xff]  }
  0x52   :  { %v1752_v30 = vld [vmem:[#allocation3 + $0xc0] ss:$8 sps:$4 sm:$0xff]   ;;  %v1753_v31 = vld [vmem:[#allocation3 + $0xd4] ss:$8 sps:$4 sm:$0xff]   ;;  %v1755_v32 = vld [vmem:[#allocation3 + $0xd0] ss:$8 sps:$4 sm:$0xff]  }
  0x53   :  { %v1756_v33 = vld [vmem:[#allocation3 + $0xe4] ss:$8 sps:$4 sm:$0xff]   ;;  %v1758_v34 = vld [vmem:[#allocation3 + $0xe0] ss:$8 sps:$4 sm:$0xff]   ;;  %v1759_v35 = vld [vmem:[#allocation3 + $0xf4] ss:$8 sps:$4 sm:$0xff]  }
  0x54   :  { %407 = vmatpush1.bf16.msra.mxu1 %v1722_v10  ;;  %v1761_v36 = vld [vmem:[#allocation3 + $0xf0] ss:$8 sps:$4 sm:$0xff]   ;;  %v1762_v37 = vld [vmem:[#allocation5] ss:$8 sps:$4 sm:$0xff]   ;;  %v1764_v38 = vld [vmem:[#allocation5 + $0x4] ss:$8 sps:$4 sm:$0xff]  }
  0x55   :  { %408 = vmatprep.subr.bf16.mxu1 %v1723_v11  ;;  %v1767_v39 = vld [vmem:[#allocation5 + $0x14] ss:$8 sps:$4 sm:$0xff]   ;;  %679 = vmatprep.subr.bf16.mxu0 %v1764_v38  ;;  %v1765_v40 = vld [vmem:[#allocation5 + $0x10] ss:$8 sps:$4 sm:$0xff]   ;;  %v1770_v41 = vld [vmem:[#allocation5 + $0x24] ss:$8 sps:$4 sm:$0xff]  }
  0x56   :  { %680 = vmatpush1.bf16.msra.mxu0 %v1762_v37  ;;  %v1768_v42 = vld [vmem:[#allocation5 + $0x20] ss:$8 sps:$4 sm:$0xff]   ;;  %v1773_v43 = vld [vmem:[#allocation5 + $0x34] ss:$8 sps:$4 sm:$0xff]   ;;  %v1771_v44 = vld [vmem:[#allocation5 + $0x30] ss:$8 sps:$4 sm:$0xff]  }
  0x57   :  { %681 = vmatprep.subr.bf16.mxu0 %v1767_v39  ;;  %v1776_v45 = vld [vmem:[#allocation5 + $0x44] ss:$8 sps:$4 sm:$0xff]   ;;  %v1774_v46 = vld [vmem:[#allocation5 + $0x40] ss:$8 sps:$4 sm:$0xff]   ;;  %v1779_v47 = vld [vmem:[#allocation5 + $0x54] ss:$8 sps:$4 sm:$0xff]  }
  0x58   :  { %409 = vmatpush1.bf16.msra.mxu1 %v1725_v12  ;;  %v1777_v48 = vld [vmem:[#allocation5 + $0x50] ss:$8 sps:$4 sm:$0xff]   ;;  %v1782_v49 = vld [vmem:[#allocation5 + $0x64] ss:$8 sps:$4 sm:$0xff]   ;;  %v1780_v50 = vld [vmem:[#allocation5 + $0x60] ss:$8 sps:$4 sm:$0xff]  }
  0x59   :  { %410 = vmatprep.subr.bf16.mxu1 %v1726_v13  ;;  %v1785_v51 = vld [vmem:[#allocation5 + $0x74] ss:$8 sps:$4 sm:$0xff]   ;;  %v1783_v52 = vld [vmem:[#allocation5 + $0x70] ss:$8 sps:$4 sm:$0xff]   ;;  %v1788_v53 = vld [vmem:[#allocation5 + $0x84] ss:$8 sps:$4 sm:$0xff]  }
  0x5a   :  { %682 = vmatpush1.bf16.msra.mxu0 %v1765_v40  ;;  %v1786_v54 = vld [vmem:[#allocation5 + $0x80] ss:$8 sps:$4 sm:$0xff]   ;;  %v1791_v55 = vld [vmem:[#allocation5 + $0x94] ss:$8 sps:$4 sm:$0xff]   ;;  %v1789_v56 = vld [vmem:[#allocation5 + $0x90] ss:$8 sps:$4 sm:$0xff]  }
  0x5b   :  { %683 = vmatprep.subr.bf16.mxu0 %v1770_v41  ;;  %v1794_v57 = vld [vmem:[#allocation5 + $0xa4] ss:$8 sps:$4 sm:$0xff]   ;;  %v1792_v58 = vld [vmem:[#allocation5 + $0xa0] ss:$8 sps:$4 sm:$0xff]   ;;  %v1797_v59 = vld [vmem:[#allocation5 + $0xb4] ss:$8 sps:$4 sm:$0xff]  }
  0x5c   :  { %411 = vmatpush1.bf16.msra.mxu1 %v1728_v14  ;;  %v1795_v60 = vld [vmem:[#allocation5 + $0xb0] ss:$8 sps:$4 sm:$0xff]   ;;  %v1800_v61 = vld [vmem:[#allocation5 + $0xc4] ss:$8 sps:$4 sm:$0xff]   ;;  %v1798_v62 = vld [vmem:[#allocation5 + $0xc0] ss:$8 sps:$4 sm:$0xff]  }
  0x5d   :  { %412 = vmatprep.subr.bf16.mxu1 %v1729_v15  ;;  %v1803_v63 = vld [vmem:[#allocation5 + $0xd4] ss:$8 sps:$4 sm:$0xff]   ;;  %v1801_v1 = vld [vmem:[#allocation5 + $0xd0] ss:$8 sps:$4 sm:$0xff]   ;;  %v2026_v2 = vmov 1966171168  }
  0x5e   :  { %684 = vmatpush1.bf16.msra.mxu0 %v1768_v42  ;;  %v179_v3 = vunpack.c.l.s4 %v2026_v2  ;;  %v182_v6 = vshrl.u32 %v181_v4, 7  ;;  %v1529_v7 = vld.sshfl [vmem:[%s2307_s2] sm:$0x11 pattern:$0x75316420] }
  0x5f   :  { %685 = vmatprep.subr.bf16.mxu0 %v1773_v43  ;;  %v177_v9 = vcombine.high %v1529_v7, %v1529_v7  ;;  %v1821_v37 = vld [vmem:[#allocation7 + $0x34] ss:$8 sps:$4 sm:$0xff]   ;;  %v1819_v38 = vld [vmem:[#allocation7 + $0x30] ss:$8 sps:$4 sm:$0xff]   ;;  %v1824_v39 = vld [vmem:[#allocation7 + $0x44] ss:$8 sps:$4 sm:$0xff]  }
  0x60   :  { %413 = vmatpush1.bf16.msra.mxu1 %v1731_v16  ;;  %v180_v5 = vunpack.c.0.s8 %v179_v3  ;;  %v2199_v13 = vsub.s32 0, %v182_v6  ;;  %v1822_v40 = vld [vmem:[#allocation7 + $0x40] ss:$8 sps:$4 sm:$0xff]   ;;  %v1827_v41 = vld [vmem:[#allocation7 + $0x54] ss:$8 sps:$4 sm:$0xff]  }
  0x61   :  { %414 = vmatprep.subr.bf16.mxu1 %v1732_v17  ;;  %v1825_v42 = vld [vmem:[#allocation7 + $0x50] ss:$8 sps:$4 sm:$0xff]   ;;  %v1830_v43 = vld [vmem:[#allocation7 + $0x64] ss:$8 sps:$4 sm:$0xff]  }
  0x62   :  { %686 = vmatpush1.bf16.msra.mxu0 %v1771_v44  ;;  %v2195_v8 = vsub.s32 %v180_v5, %v182_v6  ;;  %v1828_v44 = vld [vmem:[#allocation7 + $0x60] ss:$8 sps:$4 sm:$0xff]  }
  0x63   :  { %687 = vmatprep.subr.bf16.mxu0 %v1776_v45  ;;  %v1833_v45 = vld [vmem:[#allocation7 + $0x74] ss:$8 sps:$4 sm:$0xff]  }
  0x64   :  { %415 = vmatpush1.bf16.msra.mxu1 %v1734_v18  ;;  %v184_v10 = vrot.slane %v1529_v7, %v2195_v8  ;;  %v191_v11 = vrot.slane %v177_v9, %v2195_v8 }
  0x65   :  { %416 = vmatprep.subr.bf16.mxu1 %v1735_v19 }
  0x66   :  { %688 = vmatpush1.bf16.msra.mxu0 %v1774_v46  ;;  %v193_v12 = vpack.i.b16 %v184_v10, %v184_v10  ;;  %v200_v14 = vpack.i.b16 %v191_v11, %v191_v11  ;;  %v1831_v46 = vld [vmem:[#allocation7 + $0x70] ss:$8 sps:$4 sm:$0xff]  }
  0x67   :  { %689 = vmatprep.subr.bf16.mxu0 %v1779_v47  ;;  %v1836_v47 = vld [vmem:[#allocation7 + $0x84] ss:$8 sps:$4 sm:$0xff]  }
  0x68   :  { %417 = vmatpush1.bf16.msra.mxu1 %v1737_v20  ;;  %v198_v15 = vrot.slane %v193_v12, %v2199_v13  ;;  %v205_v17 = vrot.slane %v200_v14, %v2199_v13 }
  0x69   :  { %418 = vmatprep.subr.bf16.mxu1 %v1738_v21 }
  0x6a   :  { %690 = vmatpush1.bf16.msra.mxu0 %v1777_v48  ;;  %v1834_v48 = vld [vmem:[#allocation7 + $0x80] ss:$8 sps:$4 sm:$0xff]  }
  0x6b   :  { %691 = vmatprep.subr.bf16.mxu0 %v1782_v49  ;;  %v1839_v49 = vld [vmem:[#allocation7 + $0x94] ss:$8 sps:$4 sm:$0xff]  }
  0x6c   :  { %419 = vmatpush1.bf16.msra.mxu1 %v1740_v22 }
  0x6d   :  { %420 = vmatprep.subr.bf16.mxu1 %v1741_v23 }
  0x6e   :  { %692 = vmatpush1.bf16.msra.mxu0 %v1780_v50  ;;  %v1837_v50 = vld [vmem:[#allocation7 + $0x90] ss:$8 sps:$4 sm:$0xff]  }
  0x6f   :  { %693 = vmatprep.subr.bf16.mxu0 %v1785_v51  ;;  %v1842_v51 = vld [vmem:[#allocation7 + $0xa4] ss:$8 sps:$4 sm:$0xff]  }
  0x70   :  { %421 = vmatpush1.bf16.msra.mxu1 %v1743_v24 }
  0x71   :  { %422 = vmatprep.subr.bf16.mxu1 %v1744_v25 }
  0x72   :  { %694 = vmatpush1.bf16.msra.mxu0 %v1783_v52  ;;  %v1840_v52 = vld [vmem:[#allocation7 + $0xa0] ss:$8 sps:$4 sm:$0xff]  }
  0x73   :  { %695 = vmatprep.subr.bf16.mxu0 %v1788_v53  ;;  %v1845_v53 = vld [vmem:[#allocation7 + $0xb4] ss:$8 sps:$4 sm:$0xff]  }
  0x74   :  { %423 = vmatpush1.bf16.msra.mxu1 %v1746_v26 }
  0x75   :  { %424 = vmatprep.subr.bf16.mxu1 %v1747_v27  ;;  %v1806_v27 = vld [vmem:[#allocation5 + $0xe4] ss:$8 sps:$4 sm:$0xff]  }
  0x76   :  { %696 = vmatpush1.bf16.msra.mxu0 %v1786_v54  ;;  %v1843_v54 = vld [vmem:[#allocation7 + $0xb0] ss:$8 sps:$4 sm:$0xff]  }
  0x77   :  { %697 = vmatprep.subr.bf16.mxu0 %v1791_v55  ;;  %v1848_v55 = vld [vmem:[#allocation7 + $0xc4] ss:$8 sps:$4 sm:$0xff]  }
  0x78   :  { %425 = vmatpush1.bf16.msra.mxu1 %v1749_v28  ;;  %v1804_v28 = vld [vmem:[#allocation5 + $0xe0] ss:$8 sps:$4 sm:$0xff]  }
  0x79   :  { %426 = vmatprep.subr.bf16.mxu1 %v1750_v29  ;;  %v1809_v29 = vld [vmem:[#allocation5 + $0xf4] ss:$8 sps:$4 sm:$0xff]  }
  0x7a   :  { %698 = vmatpush1.bf16.msra.mxu0 %v1789_v56  ;;  %v1846_v56 = vld [vmem:[#allocation7 + $0xc0] ss:$8 sps:$4 sm:$0xff]  }
  0x7b   :  { %699 = vmatprep.subr.bf16.mxu0 %v1794_v57  ;;  %v1851_v57 = vld [vmem:[#allocation7 + $0xd4] ss:$8 sps:$4 sm:$0xff]  }
  0x7c   :  { %427 = vmatpush1.bf16.msra.mxu1 %v1752_v30  ;;  %v1807_v30 = vld [vmem:[#allocation5 + $0xf0] ss:$8 sps:$4 sm:$0xff]  }
  0x7d   :  { %428 = vmatprep.subr.bf16.mxu1 %v1753_v31  ;;  %v1810_v31 = vld [vmem:[#allocation7] ss:$8 sps:$4 sm:$0xff]  }
  0x7e   :  { %700 = vmatpush1.bf16.msra.mxu0 %v1792_v58  ;;  %v1849_v58 = vld [vmem:[#allocation7 + $0xd0] ss:$8 sps:$4 sm:$0xff]  }
  0x7f   :  { %701 = vmatprep.subr.bf16.mxu0 %v1797_v59  ;;  %v1562_v59 = vld.sshfl [vmem:[%s2309_s4] sm:$0x11 pattern:$0x75316420] }
  0x80   :  { %429 = vmatpush1.bf16.msra.mxu1 %v1755_v32  ;;  %v1812_v32 = vld [vmem:[#allocation7 + $0x4] ss:$8 sps:$4 sm:$0xff]  }
  0x81   :  { %430 = vmatprep.subr.bf16.mxu1 %v1756_v33  ;;  %v1815_v33 = vld [vmem:[#allocation7 + $0x14] ss:$8 sps:$4 sm:$0xff]  }
  0x82   :  { %702 = vmatpush1.bf16.msra.mxu0 %v1795_v60  ;;  %v454_v60 = vcombine.high %v1562_v59, %v1562_v59 }
  0x83   :  { %703 = vmatprep.subr.bf16.mxu0 %v1800_v61  ;;  %v461_v61 = vrot.slane %v1562_v59, %v2195_v8 }
  0x84   :  { %431 = vmatpush1.bf16.msra.mxu1 %v1758_v34  ;;  %v1813_v34 = vld [vmem:[#allocation7 + $0x10] ss:$8 sps:$4 sm:$0xff]  }
  0x85   :  { %432 = vmatprep.subr.bf16.mxu1 %v1759_v35  ;;  %v1818_v35 = vld [vmem:[#allocation7 + $0x24] ss:$8 sps:$4 sm:$0xff]  }
  0x86   :  { %704 = vmatpush1.bf16.msra.mxu0 %v1798_v62  ;;  %v468_v62 = vrot.slane %v454_v60, %v2195_v8 }
  0x87   :  { %705 = vmatprep.subr.bf16.mxu0 %v1803_v63  ;;  %v470_v63 = vpack.i.b16 %v461_v61, %v461_v61 }
  0x88   :  { %433 = vmatpush1.bf16.msra.mxu1 %v1761_v36  ;;  %v1816_v36 = vld [vmem:[#allocation7 + $0x20] ss:$8 sps:$4 sm:$0xff]  }
  0x89   :  { %956 = vmatprep.subr.bf16.mxu1 %v1812_v32  ;;  %v475_v2 = vrot.slane %v470_v63, %v2199_v13  ;;  %v1878_v32 = vld [vmem:[#allocation8 + $0x64] ss:$8 sps:$4 sm:$0xff]  }
  0x8a   :  { %706 = vmatpush1.bf16.msra.mxu0 %v1801_v1  ;;  %v477_v1 = vpack.i.b16 %v468_v62, %v468_v62 }
  0x8b   :  { %707 = vmatprep.subr.bf16.mxu0 %v1806_v27  ;;  %v1867_v27 = vld [vmem:[#allocation8 + $0x30] ss:$8 sps:$4 sm:$0xff]  }
  0x8c   :  { %v482_v4 = vrot.slane %v477_v1, %v2199_v13 }
  0x8e   :  { %708 = vmatpush1.bf16.msra.mxu0 %v1804_v28  ;;  %v1872_v28 = vld [vmem:[#allocation8 + $0x44] ss:$8 sps:$4 sm:$0xff]  }
  0x8f   :  { %709 = vmatprep.subr.bf16.mxu0 %v1809_v29  ;;  %v1870_v29 = vld [vmem:[#allocation8 + $0x40] ss:$8 sps:$4 sm:$0xff]  }
  0x92   :  { %710 = vmatpush1.bf16.msra.mxu0 %v1807_v30  ;;  %v1875_v30 = vld [vmem:[#allocation8 + $0x54] ss:$8 sps:$4 sm:$0xff]  }
 0x120   :  { %v159_v16 = vpop.f32.mrb[0].mxu0 }
 0x121   :  { %v166_v18 = vpack.c.bf16 %v159_v16, %v159_v16  ;;  %v161_v19 = vpop.f32.mrb[1].mxu0  ;;  %v1854_v16 = vld [vmem:[#allocation7 + $0xe4] ss:$8 sps:$4 sm:$0xff]  }
 0x122   :  { %v167_v20 = vpack.c.bf16 %v161_v19, %v161_v19  ;;  %v163_v21 = vpop.f32.mrb[2].mxu0  ;;  %v1855_v19 = vld [vmem:[#allocation7 + $0xf0] ss:$8 sps:$4 sm:$0xff]  }
 0x123   :  { %v206_v22 = vadd.bf16 %v198_v15, %v166_v18  ;;  %v164_v23 = vpop.f32.mrb[3].mxu0  ;;  %v1857_v18 = vld [vmem:[#allocation7 + $0xf4] ss:$8 sps:$4 sm:$0xff]   ;;  %v1860_v21 = vld [vmem:[#allocation8 + $0x4] ss:$8 sps:$4 sm:$0xff]  }
 0x124   :  { %v207_v24 = vadd.bf16 %v205_v17, %v167_v20  ;;  %v1852_v17 = vld [vmem:[#allocation7 + $0xe0] ss:$8 sps:$4 sm:$0xff]   ;;  %1233 = vmatprep.subr.bf16.mxu0 %v1860_v21  ;;  %v1861_v23 = vld [vmem:[#allocation8 + $0x10] ss:$8 sps:$4 sm:$0xff]  }
 0x125   :  { %v208_v26 = vmax.bf16 %v2025_v0, %v206_v22  ;;  %v1858_v20 = vld [vmem:[#allocation8] ss:$8 sps:$4 sm:$0xff]   ;;  %v1863_v22 = vld [vmem:[#allocation8 + $0x14] ss:$8 sps:$4 sm:$0xff]  }
 0x126   :  { %v209_v25 = vmax.bf16 %v2025_v0, %v207_v24  ;;  %v1866_v24 = vld [vmem:[#allocation8 + $0x24] ss:$8 sps:$4 sm:$0xff]   ;;  %v1628_v21 = vld.sshfl [vmem:[%s2313_s8] sm:$0x11 pattern:$0x75316420] }
 0x128   :  { %434 = vmatprep.mubr.bf16.mxu1 %v209_v25  ;;  %v1864_v25 = vld [vmem:[#allocation8 + $0x20] ss:$8 sps:$4 sm:$0xff]  }
 0x129   :  { %435 = vmatmul.mubr.bf16.vlgmr.msra.gmra.mrb[0].mxu1 %v208_v26  ;;  %v1869_v26 = vld [vmem:[#allocation8 + $0x34] ss:$8 sps:$4 sm:$0xff]  }
 0x12a   :  { %957 = vmatpush1.bf16.msra.mxu1 %v1810_v31  ;;  %v1873_v31 = vld [vmem:[#allocation8 + $0x50] ss:$8 sps:$4 sm:$0xff]  }
 0x12b   :  { %958 = vmatprep.subr.bf16.mxu1 %v1815_v33  ;;  %v1876_v33 = vld [vmem:[#allocation8 + $0x60] ss:$8 sps:$4 sm:$0xff]  }
 0x12e   :  { %959 = vmatpush1.bf16.msra.mxu1 %v1813_v34  ;;  %v1881_v34 = vld [vmem:[#allocation8 + $0x74] ss:$8 sps:$4 sm:$0xff]  }
 0x12f   :  { %960 = vmatprep.subr.bf16.mxu1 %v1818_v35  ;;  %v1879_v35 = vld [vmem:[#allocation8 + $0x70] ss:$8 sps:$4 sm:$0xff]  }
 0x132   :  { %961 = vmatpush1.bf16.msra.mxu1 %v1816_v36  ;;  %v1884_v36 = vld [vmem:[#allocation8 + $0x84] ss:$8 sps:$4 sm:$0xff]  }
 0x133   :  { %962 = vmatprep.subr.bf16.mxu1 %v1821_v37  ;;  %v1882_v37 = vld [vmem:[#allocation8 + $0x80] ss:$8 sps:$4 sm:$0xff]  }
 0x136   :  { %963 = vmatpush1.bf16.msra.mxu1 %v1819_v38  ;;  %v1887_v38 = vld [vmem:[#allocation8 + $0x94] ss:$8 sps:$4 sm:$0xff]  }
 0x137   :  { %964 = vmatprep.subr.bf16.mxu1 %v1824_v39  ;;  %v1885_v39 = vld [vmem:[#allocation8 + $0x90] ss:$8 sps:$4 sm:$0xff]  }
 0x13a   :  { %965 = vmatpush1.bf16.msra.mxu1 %v1822_v40  ;;  %v1890_v40 = vld [vmem:[#allocation8 + $0xa4] ss:$8 sps:$4 sm:$0xff]  }
 0x13b   :  { %966 = vmatprep.subr.bf16.mxu1 %v1827_v41  ;;  %v1888_v41 = vld [vmem:[#allocation8 + $0xa0] ss:$8 sps:$4 sm:$0xff]  }
 0x13e   :  { %967 = vmatpush1.bf16.msra.mxu1 %v1825_v42  ;;  %v1893_v42 = vld [vmem:[#allocation8 + $0xb4] ss:$8 sps:$4 sm:$0xff]  }
 0x13f   :  { %968 = vmatprep.subr.bf16.mxu1 %v1830_v43  ;;  %v1891_v43 = vld [vmem:[#allocation8 + $0xb0] ss:$8 sps:$4 sm:$0xff]  }
 0x142   :  { %969 = vmatpush1.bf16.msra.mxu1 %v1828_v44  ;;  %v1896_v44 = vld [vmem:[#allocation8 + $0xc4] ss:$8 sps:$4 sm:$0xff]  }
 0x143   :  { %970 = vmatprep.subr.bf16.mxu1 %v1833_v45  ;;  %v1894_v45 = vld [vmem:[#allocation8 + $0xc0] ss:$8 sps:$4 sm:$0xff]  }
 0x146   :  { %971 = vmatpush1.bf16.msra.mxu1 %v1831_v46  ;;  %v1899_v46 = vld [vmem:[#allocation8 + $0xd4] ss:$8 sps:$4 sm:$0xff]  }
 0x147   :  { %972 = vmatprep.subr.bf16.mxu1 %v1836_v47  ;;  %v1897_v47 = vld [vmem:[#allocation8 + $0xd0] ss:$8 sps:$4 sm:$0xff]  }
 0x14a   :  { %973 = vmatpush1.bf16.msra.mxu1 %v1834_v48  ;;  %v1595_v48 = vld.sshfl [vmem:[%s2311_s6] sm:$0x11 pattern:$0x75316420] }
 0x14b   :  { %974 = vmatprep.subr.bf16.mxu1 %v1839_v49  ;;  %v731_v49 = vcombine.high %v1595_v48, %v1595_v48 }
 0x14e   :  { %975 = vmatpush1.bf16.msra.mxu1 %v1837_v50  ;;  %v738_v50 = vrot.slane %v1595_v48, %v2195_v8 }
 0x14f   :  { %976 = vmatprep.subr.bf16.mxu1 %v1842_v51  ;;  %v745_v51 = vrot.slane %v731_v49, %v2195_v8 }
 0x152   :  { %977 = vmatpush1.bf16.msra.mxu1 %v1840_v52  ;;  %v747_v52 = vpack.i.b16 %v738_v50, %v738_v50 }
 0x153   :  { %978 = vmatprep.subr.bf16.mxu1 %v1845_v53  ;;  %v754_v53 = vpack.i.b16 %v745_v51, %v745_v51 }
 0x156   :  { %979 = vmatpush1.bf16.msra.mxu1 %v1843_v54  ;;  %v752_v54 = vrot.slane %v747_v52, %v2199_v13 }
 0x157   :  { %980 = vmatprep.subr.bf16.mxu1 %v1848_v55 }
 0x15a   :  { %981 = vmatpush1.bf16.msra.mxu1 %v1846_v56  ;;  %v759_v56 = vrot.slane %v754_v53, %v2199_v13 }
 0x15b   :  { %982 = vmatprep.subr.bf16.mxu1 %v1851_v57 }
 0x15e   :  { %983 = vmatpush1.bf16.msra.mxu1 %v1849_v58 }
 0x15f   :  { %984 = vmatprep.subr.bf16.mxu1 %v1854_v16  ;;  %v1913_v16 = vld [vmem:[%s2316_s11 + $0x18] sm:$0xff]  }
 0x162   :  { %985 = vmatpush1.bf16.msra.mxu1 %v1852_v17  ;;  %v1914_v17 = vld [vmem:[%s2316_s11 + $0x60] sm:$0xff]  }
 0x163   :  { %986 = vmatprep.subr.bf16.mxu1 %v1857_v18  ;;  %v1915_v18 = vld [vmem:[%s2316_s11 + $0x20] sm:$0xff]  }
 0x166   :  { %987 = vmatpush1.bf16.msra.mxu1 %v1855_v19  ;;  %v1916_v19 = vld [vmem:[%s2316_s11 + $0x68] sm:$0xff]  }
 0x1fc   :  { %v436_v3 = vpop.f32.mrb[0].mxu1 }
 0x1fd   :  { %v443_v5 = vpack.c.bf16 %v436_v3, %v436_v3  ;;  %v438_v6 = vpop.f32.mrb[1].mxu1  ;;  %v1902_v3 = vld [vmem:[#allocation8 + $0xe4] ss:$8 sps:$4 sm:$0xff]  }
 0x1fe   :  { %v444_v7 = vpack.c.bf16 %v438_v6, %v438_v6  ;;  %v440_v9 = vpop.f32.mrb[2].mxu1  ;;  %v1903_v6 = vld [vmem:[#allocation8 + $0xf0] ss:$8 sps:$4 sm:$0xff]  }
 0x1ff   :  { %v483_v10 = vadd.bf16 %v475_v2, %v443_v5  ;;  %v441_v11 = vpop.f32.mrb[3].mxu1  ;;  %v1905_v5 = vld [vmem:[#allocation8 + $0xf4] ss:$8 sps:$4 sm:$0xff]   ;;  %v1907_v9 = vld [vmem:[%s2316_s11] sm:$0xff]  }
 0x200   :  { %v484_v12 = vadd.bf16 %v482_v4, %v444_v7  ;;  %v1900_v4 = vld [vmem:[#allocation8 + $0xe0] ss:$8 sps:$4 sm:$0xff]  }
 0x201   :  { %v485_v15 = vmax.bf16 %v2025_v0, %v483_v10  ;;  %v1906_v7 = vld [vmem:[%s2316_s11 + $0x40] sm:$0xff]   ;;  %v1908_v10 = vld [vmem:[%s2316_s11 + $0x48] sm:$0xff]  }
 0x202   :  { %v486_v14 = vmax.bf16 %v2025_v0, %v484_v12  ;;  %1681 = vmatprep.subr.bf16.mxu1 %v1906_v7  ;;  %v1909_v11 = vld [vmem:[%s2316_s11 + $0x8] sm:$0xff]   ;;  %v1910_v12 = vld [vmem:[%s2316_s11 + $0x50] sm:$0xff]  }
 0x204   :  { %711 = vmatprep.mubr.bf16.mxu0 %v486_v14  ;;  %v1911_v14 = vld [vmem:[%s2316_s11 + $0x10] sm:$0xff]  }
 0x205   :  { %712 = vmatmul.mubr.bf16.vlgmr.msra.gmra.mrb[4].mxu0 %v485_v15  ;;  %v1912_v15 = vld [vmem:[%s2316_s11 + $0x58] sm:$0xff]  }
 0x206   :  { %1234 = vmatpush1.bf16.msra.mxu0 %v1858_v20  ;;  %v1917_v20 = vld [vmem:[%s2316_s11 + $0x28] sm:$0xff]  }
 0x207   :  { %1235 = vmatprep.subr.bf16.mxu0 %v1863_v22  ;;  %v1008_v22 = vcombine.high %v1628_v21, %v1628_v21 }
 0x20a   :  { %1236 = vmatpush1.bf16.msra.mxu0 %v1861_v23  ;;  %v1015_v23 = vrot.slane %v1628_v21, %v2195_v8 }
 0x20b   :  { %1237 = vmatprep.subr.bf16.mxu0 %v1866_v24  ;;  %v1022_v24 = vrot.slane %v1008_v22, %v2195_v8 }
 0x20e   :  { %1238 = vmatpush1.bf16.msra.mxu0 %v1864_v25  ;;  %v1024_v25 = vpack.i.b16 %v1015_v23, %v1015_v23 }
 0x20f   :  { %1239 = vmatprep.subr.bf16.mxu0 %v1869_v26  ;;  %v1031_v26 = vpack.i.b16 %v1022_v24, %v1022_v24 }
 0x212   :  { %1240 = vmatpush1.bf16.msra.mxu0 %v1867_v27  ;;  %v1029_v27 = vrot.slane %v1024_v25, %v2199_v13 }
 0x213   :  { %1241 = vmatprep.subr.bf16.mxu0 %v1872_v28 }
 0x216   :  { %1242 = vmatpush1.bf16.msra.mxu0 %v1870_v29  ;;  %v1036_v29 = vrot.slane %v1031_v26, %v2199_v13 }
 0x217   :  { %1243 = vmatprep.subr.bf16.mxu0 %v1875_v30 }
 0x21a   :  { %1244 = vmatpush1.bf16.msra.mxu0 %v1873_v31 }
 0x21b   :  { %1245 = vmatprep.subr.bf16.mxu0 %v1878_v32 }
 0x21e   :  { %1246 = vmatpush1.bf16.msra.mxu0 %v1876_v33 }
 0x21f   :  { %1247 = vmatprep.subr.bf16.mxu0 %v1881_v34 }
 0x222   :  { %1248 = vmatpush1.bf16.msra.mxu0 %v1879_v35 }
 0x223   :  { %1249 = vmatprep.subr.bf16.mxu0 %v1884_v36 }
 0x226   :  { %1250 = vmatpush1.bf16.msra.mxu0 %v1882_v37 }
 0x227   :  { %1251 = vmatprep.subr.bf16.mxu0 %v1887_v38 }
 0x22a   :  { %1252 = vmatpush1.bf16.msra.mxu0 %v1885_v39  ;;  %v1918_v39 = vld [vmem:[%s2316_s11 + $0x70] sm:$0xff]  }
 0x22b   :  { %1253 = vmatprep.subr.bf16.mxu0 %v1890_v40  ;;  %v1919_v40 = vld [vmem:[%s2316_s11 + $0x30] sm:$0xff]  }
 0x22e   :  { %1254 = vmatpush1.bf16.msra.mxu0 %v1888_v41  ;;  %v1920_v41 = vld [vmem:[%s2316_s11 + $0x78] sm:$0xff]  }
 0x22f   :  { %1255 = vmatprep.subr.bf16.mxu0 %v1893_v42  ;;  %v1921_v42 = vld [vmem:[%s2316_s11 + $0x38] sm:$0xff]  }
 0x232   :  { %1256 = vmatpush1.bf16.msra.mxu0 %v1891_v43  ;;  %v1661_v43 = vld.sshfl [vmem:[%s2315_s10] sm:$0x11 pattern:$0x75316420] }
 0x233   :  { %1257 = vmatprep.subr.bf16.mxu0 %v1896_v44  ;;  %v1285_v44 = vcombine.high %v1661_v43, %v1661_v43 }
 0x236   :  { %1258 = vmatpush1.bf16.msra.mxu0 %v1894_v45  ;;  %v1292_v45 = vrot.slane %v1661_v43, %v2195_v8 }
 0x237   :  { %1259 = vmatprep.subr.bf16.mxu0 %v1899_v46  ;;  %v1299_v46 = vrot.slane %v1285_v44, %v2195_v8 }
 0x239   :  { %v1308_v48 = vpack.i.b16 %v1299_v46, %v1299_v46 }
 0x23a   :  { %1260 = vmatpush1.bf16.msra.mxu0 %v1897_v47  ;;  %v1301_v47 = vpack.i.b16 %v1292_v45, %v1292_v45 }
 0x23b   :  { %1261 = vmatprep.subr.bf16.mxu0 %v1902_v3  ;;  %v1313_v51 = vrot.slane %v1308_v48, %v2199_v13 }
 0x23c   :  { %v1306_v49 = vrot.slane %v1301_v47, %v2199_v13  ;;  %v1678_v13 = vld [vmem:[%s2317_s12] ss:$0 sm:$0xff] }
 0x23e   :  { %1262 = vmatpush1.bf16.msra.mxu0 %v1900_v4 }
 0x23f   :  { %1263 = vmatprep.subr.bf16.mxu0 %v1905_v5 }
 0x242   :  { %1264 = vmatpush1.bf16.msra.mxu0 %v1903_v6 }
 0x2d8   :  { %v713_v55 = vpop.f32.mrb[4].mxu0 }
 0x2d9   :  { %v720_v57 = vpack.c.bf16 %v713_v55, %v713_v55  ;;  %v715_v58 = vpop.f32.mrb[5].mxu0 }
 0x2da   :  { %v721_v59 = vpack.c.bf16 %v715_v58, %v715_v58  ;;  %v717_v60 = vpop.f32.mrb[6].mxu0 }
 0x2db   :  { %v760_v61 = vadd.bf16 %v752_v54, %v720_v57  ;;  %v718_v62 = vpop.f32.mrb[7].mxu0 }
 0x2dc   :  { %v761_v63 = vadd.bf16 %v759_v56, %v721_v59 }
 0x2dd   :  { %v762_v2 = vmax.bf16 %v2025_v0, %v760_v61 }
 0x2de   :  { %v763_v1 = vmax.bf16 %v2025_v0, %v761_v63 }
 0x2e0   :  { %988 = vmatprep.mubr.bf16.mxu1 %v763_v1 }
 0x2e1   :  { %989 = vmatmul.mubr.bf16.vlgmr.msra.gmra.mrb[4].mxu1 %v762_v2  ;;  %v1924_v2 = vld [vmem:[%s2305_s0] sm:$0xff] }
 0x2e2   :  { %1682 = vmatpush3.bf16.msra.mxu1 %v1907_v9  ;;  %v1508_v9 = vstv %s2319_s14 }
 0x2e3   :  { %1683 = vmatprep.subr.bf16.mxu1 %v1908_v10 }
 0x2e6   :  { %1684 = vmatpush3.bf16.msra.mxu1 %v1909_v11 }
 0x2e7   :  { %1685 = vmatprep.subr.bf16.mxu1 %v1910_v12 }
 0x2ea   :  { %1686 = vmatpush3.bf16.msra.mxu1 %v1911_v14 }
 0x2eb   :  { %1687 = vmatprep.subr.bf16.mxu1 %v1912_v15 }
 0x2ee   :  { %1688 = vmatpush3.bf16.msra.mxu1 %v1913_v16 }
 0x2ef   :  { %1689 = vmatprep.subr.bf16.mxu1 %v1914_v17 }
 0x2f2   :  { %1690 = vmatpush3.bf16.msra.mxu1 %v1915_v18 }
 0x2f3   :  { %1691 = vmatprep.subr.bf16.mxu1 %v1916_v19 }
 0x2f6   :  { %1692 = vmatpush3.bf16.msra.mxu1 %v1917_v20 }
 0x2f7   :  { %1693 = vmatprep.subr.bf16.mxu1 %v1918_v39 }
 0x2fa   :  { %1694 = vmatpush3.bf16.msra.mxu1 %v1919_v40 }
 0x2fb   :  { %1695 = vmatprep.subr.bf16.mxu1 %v1920_v41 }
 0x2fe   :  { %1696 = vmatpush3.bf16.msra.mxu1 %v1921_v42 }
 0x3b4   :  { %v990_v28 = vpop.f32.mrb[4].mxu1 }
 0x3b5   :  { %v997_v30 = vpack.c.bf16 %v990_v28, %v990_v28  ;;  %v992_v31 = vpop.f32.mrb[5].mxu1 }
 0x3b6   :  { %v998_v32 = vpack.c.bf16 %v992_v31, %v992_v31  ;;  %v994_v33 = vpop.f32.mrb[6].mxu1 }
 0x3b7   :  { %v1037_v34 = vadd.bf16 %v1029_v27, %v997_v30  ;;  %v995_v35 = vpop.f32.mrb[7].mxu1 }
 0x3b8   :  { %v1038_v36 = vadd.bf16 %v1036_v29, %v998_v32 }
 0x3b9   :  { %v1039_v38 = vmax.bf16 %v2025_v0, %v1037_v34 }
 0x3ba   :  { %v1040_v37 = vmax.bf16 %v2025_v0, %v1038_v36 }
 0x3bc   :  { %1265 = vmatprep.mubr.bf16.mxu0 %v1040_v37 }
 0x3bd   :  { %1266 = vmatmul.mubr.bf16.vlgmr.msra.gmra.mrb[8].mxu0 %v1039_v38 }
 0x490   :  { %v1267_v50 = vpop.f32.mrb[8].mxu0 }
 0x491   :  { %v1274_v52 = vpack.c.bf16 %v1267_v50, %v1267_v50  ;;  %v1269_v53 = vpop.f32.mrb[9].mxu0 }
 0x492   :  { %v1275_v54 = vpack.c.bf16 %v1269_v53, %v1269_v53  ;;  %v1271_v55 = vpop.f32.mrb[10].mxu0 }
 0x493   :  { %v1314_v56 = vadd.bf16 %v1306_v49, %v1274_v52  ;;  %v1272_v57 = vpop.f32.mrb[11].mxu0 }
 0x494   :  { %v1315_v58 = vadd.bf16 %v1313_v51, %v1275_v54 }
 0x495   :  { %v1316_v60 = vmax.bf16 %v2025_v0, %v1314_v56 }
 0x496   :  { %v1317_v59 = vmax.bf16 %v2025_v0, %v1315_v58  ;;  %v1679_v0 = vld [vmem:[%s2318_s13] ss:$0 sm:$0xff] }
 0x498   :  { %1478 = vmatprep.mubr.bf16.mxu1 %v1317_v59 }
 0x499   :  { %1479 = vmatmul.mubr.bf16.vlgmr.msra.gmra.mrb[8].mxu1 %v1316_v60 }
 0x56c   :  { %v1697_v8 = vpop.f32.mrb[8].mxu1 }
 0x56d   :  { %v1698_v61 = vpop.f32.mrb[9].mxu1 }
 0x56e   :  { %v1699_v62 = vadd.f32 %v1698_v61, %v1697_v8  ;;  %v1700_v63 = vpop.f32.mrb[10].mxu1 }
 0x56f   :  { %v1701_v1 = vpop.f32.mrb[11].mxu1 }
 0x570   :  { %v1486_v3 = vadd.f32 %v1924_v2, %v1699_v62 }
 0x572   :  { %v1494_v4 = vadd.f32 %v1678_v13, %v1486_v3 }
 0x574   :  { %v1495_v5 = vmax.f32 %v1494_v4, 0.0 }
 0x576   :  { %v1503_v6 = vmul.f32 %v1679_v0, %v1495_v5 }
 0x578   :  { %v1504_v7 = vsel %vm121_vm0, %v1503_v6, 0.0 }
 0x579   :  { %1505 = vadd.xlane.f32.xlu0 %v1504_v7 }
 0x606   :  { %v1506_v10 = vpop.xlane.xlu0 %1505 }
 0x607   :  { %v1509_v11 = vadd.f32 %v1508_v9, %v1506_v10 }
 0x609   :  { %v1511_v12 = vmul.f32 1.442695, %v1509_v11  ;;  %vm1510_vm1 = vcmp.gt.f32.partialorder %v1509_v11, 0.0 }
 0x60b   :  { %1922 = vpow2.f32 %v1511_v12 }
 0x615   :  { %v1923_v14 = vpop.eup %1922 }
 0x616   :  { %v1680_v15 = vadd.f32 -1.0, %v1923_v14 }
 0x618   :  { %v1514_v16 = vmul.f32 1.6732632, %v1680_v15 }
 0x61a   :  { %v1515_v17 = vsel %vm1510_vm1, %v1509_v11, %v1514_v16 }
 0x61b   :  { %v1516_v18 = vmul.f32 1.050701, %v1515_v17 }
 0x61d   :  { %1518 = vst.msk [vmem:[%s2320_s15] sm:$0xff] %vm1517_vm2, %v1516_v18 }
 0x61e   :  { %1523 = vsyncpa [#allocation4], 1 }
 0x61f   :  { %1524 = vsyncpa [#allocation6], 1 }
 0x620   :  { %1525 = vsyncpa [#allocation9], 1 }

</bundles_post_ra>
